<compile_context>
chip_gen: v7x
topology: tpu7x:2x2x1
jax: 0.10.0
libtpu: 0.0.40
codegen_flags: <defaults>
</compile_context>

<pallas_src>
import functools

import jax
import jax.numpy as jnp
from jax.experimental import pallas as pl
from jax.experimental.pallas import tpu as pltpu

NEG_SLOPE = 0.01   # torch.nn.LeakyReLU default negative_slope
LANE = 128
SUBLANE = 8


def _round_up(n, m):
    return ((n + m - 1) // m) * m


def _leaky_relu(x):
    return jnp.where(x >= 0, x, NEG_SLOPE * x)


def _vmem_spec():
    return pl.BlockSpec(memory_space=pltpu.MemorySpace.VMEM)


def _vmem_budget():
    """Per-generation VMEM budget: ~80% of physical, conservative fallback."""
    try:
        info = pltpu.get_tpu_info()
        cap = int(getattr(info, "vmem_capacity_bytes", 0))
    except Exception:
        cap = 0
    if cap <= 0:
        return 48 * 1024 * 1024          # safe on v5e/v6e/v7x
    return int(cap * 0.8)                # v7x ~52 MiB, v5e/v6e ~102 MiB


def _pad2d(a, rows, cols):
    return jnp.pad(a, ((0, rows - a.shape[0]), (0, cols - a.shape[1])))


def _pick_tile(n_pad):
    for t in (512, 256, 128):
        if n_pad % t == 0:
            return t
    return 128


# ----------------------------- fused single-launch kernel ------------------------- #

def gnn_fused_kernel(*refs, num_layers, with_pool, num_graphs_padded):
    """Input Linear -> L x (A_hat @ (H W) + b) [LeakyReLU between layers, eval-mode
    dropout no-op] -> optional global mean pool. All matmuls bf16 MXU, f32 accumulate.

    refs (with_pool=True ): x, adj, w_in, b_in, W_stack, B_stack, batch -> graph_out
    refs (with_pool=False): x, adj, w_in, b_in, W_stack, B_stack        -> node_out
    """
    if with_pool:
        (x_ref, adj_ref, wi_ref, bi_ref, w_ref, b_ref, batch_ref, graph_ref) = refs
    else:
        (x_ref, adj_ref, wi_ref, bi_ref, w_ref, b_ref, node_ref) = refs

    # input_proj: Linear(input_dim, hidden_dim); bf16 operands, f32 accumulation.
    h = jnp.dot(x_ref[...], wi_ref[...],
                preferred_element_type=jnp.float32) + bi_ref[...]
    hb = h.astype(jnp.bfloat16)

    adj = adj_ref[...]                     # (N_pad, N_pad) bf16
    for l in range(num_layers):            # small static L -> unrolled
        # GCN-style GraphConv: h' = A_hat @ (h W) + b
        # TODO(synk): PyG GraphConv (W1*x_i + W2*sum_j x_j, add-aggr, unnormalized)
        # would need a separate root-weight term; this is GCNConv-style propagation.
        hw = jnp.dot(hb, w_ref[l],
                     preferred_element_type=jnp.float32).astype(jnp.bfloat16)
        h = jnp.dot(adj, hw, preferred_element_type=jnp.float32) + b_ref[l]
        if l < num_layers - 1:
            h = _leaky_relu(h)
            # TODO(synk): F.dropout(p=0.5) is identity in eval mode; training-mode
            # stochastic dropout is not implemented here.
        hb = h.astype(jnp.bfloat16)

    if with_pool:
        # global_mean_pool: bf16 one-hot matmul, deferred normalization by 1/count.
        bat = batch_ref[...]                                        # (1, N_pad) int32
        gids = jax.lax.broadcasted_iota(
            jnp.int32, (num_graphs_padded, bat.shape[1]), 0)
        match = bat == gids                                         # padded nodes = -1
        one_hot = match.astype(jnp.bfloat16)
        counts = jnp.maximum(
            jnp.sum(match.astype(jnp.float32), axis=1, keepdims=True), 1.0)
        summed = jnp.dot(one_hot, hb, preferred_element_type=jnp.float32)
        graph_ref[...] = summed * pl.reciprocal(counts, approx=True)
    else:
        node_ref[...] = h                  # JK == 'last' (f32 final layer)


# ------------------------- tiled (large-N) kernels -------------------------------- #

def _proj_kernel(x_ref, w_ref, b_ref, o_ref):
    o_ref[...] = (jnp.dot(x_ref[...], w_ref[...],
                          preferred_element_type=jnp.float32)
                  + b_ref[...]).astype(o_ref.dtype)


def _matmul_kernel(a_ref, b_ref, o_ref):
    o_ref[...] = jnp.dot(a_ref[...], b_ref[...],
                         preferred_element_type=jnp.float32).astype(o_ref.dtype)


def _propagate_kernel(adj_ref, hw_ref, b_ref, o_ref, acc_ref, *, apply_act):
    """Row-tiled, K-streamed A_hat @ HW + b (+ LeakyReLU)."""
    k = pl.program_id(1)

    @pl.when(k == 0)
    def _():
        acc_ref[...] = jnp.zeros_like(acc_ref)

    acc_ref[...] += jnp.dot(adj_ref[...], hw_ref[...],
                            preferred_element_type=jnp.float32)

    @pl.when(k == pl.num_programs(1) - 1)
    def _():
        out = acc_ref[...] + b_ref[...]
        if apply_act:
            out = _leaky_relu(out)
        o_ref[...] = out.astype(o_ref.dtype)


def _pool_kernel(batch_ref, h_ref, graph_ref, *, num_graphs_padded):
    h = h_ref[...].astype(jnp.bfloat16)
    bat = batch_ref[...]
    gids = jax.lax.broadcasted_iota(jnp.int32, (num_graphs_padded, bat.shape[1]), 0)
    match = bat == gids
    one_hot = match.astype(jnp.bfloat16)
    counts = jnp.maximum(
        jnp.sum(match.astype(jnp.float32), axis=1, keepdims=True), 1.0)
    summed = jnp.dot(one_hot, h, preferred_element_type=jnp.float32)
    graph_ref[...] = summed * pl.reciprocal(counts, approx=True)


def _forward_tiled(prep):
    """Per-layer propagation with the adjacency streamed in (t, t) bf16 tiles."""
    n_pad, f_pad = prep["x"].shape[0], prep["w_in"].shape[1]
    num_layers = prep["w_stack"].shape[0]
    t = _pick_tile(n_pad)
    simple_cp = pltpu.CompilerParams(vmem_limit_bytes=_vmem_budget())

    # input projection (whole-array; (N,F)/(D,F) operands are small vs. the (N,N) adj)
    # TODO(synk): row-tile this too for graphs with very large N * input_dim.
    h = pl.pallas_call(
        _proj_kernel,
        out_shape=jax.ShapeDtypeStruct((n_pad, f_pad), jnp.bfloat16),
        in_specs=[_vmem_spec()] * 3, out_specs=_vmem_spec(),
        compiler_params=simple_cp,
    )(prep["x"], prep["w_in"], prep["b_in"])

    for l in range(num_layers):
        last = l == num_layers - 1
        hw = pl.pallas_call(
            _matmul_kernel,
            out_shape=jax.ShapeDtypeStruct((n_pad, f_pad), jnp.bfloat16),
            in_specs=[_vmem_spec()] * 2, out_specs=_vmem_spec(),
            compiler_params=simple_cp,
        )(h, prep["w_stack"][l])

        h = pl.pallas_call(
            functools.partial(_propagate_kernel, apply_act=not last),
            out_shape=jax.ShapeDtypeStruct(
                (n_pad, f_pad), jnp.float32 if last else jnp.bfloat16),
            grid_spec=pltpu.PrefetchScalarGridSpec(
                num_scalar_prefetch=0,
                grid=(n_pad // t, n_pad // t),
                in_specs=[
                    # TODO(synk): pipeline_mode=pl.Buffered(3) on this spec helps on
                    # v5e's slower HBM; default double-buffering is fine on v6e/v7x.
                    pl.BlockSpec((t, t), lambda i, k: (i, k)),
                    pl.BlockSpec((t, f_pad), lambda i, k: (k, 0)),
                    pl.BlockSpec((1, f_pad), lambda i, k: (0, 0)),
                ],
                out_specs=pl.BlockSpec((t, f_pad), lambda i, k: (i, 0)),
                scratch_shapes=[pltpu.VMEM((t, f_pad), jnp.float32)],
            ),
            compiler_params=pltpu.CompilerParams(
                dimension_semantics=("parallel", "arbitrary"),
                vmem_limit_bytes=_vmem_budget()),
        )(prep["adj"], hw, prep["b_stack"][l])
    return h                                 # (n_pad, f_pad) f32


# ------------------------------ JAX wrappers --------------------------------------- #

def prepare_operands(x, adj_norm, params):
    """Pad to lane-dense shapes, cast to bf16 and stack layer weights ONCE."""
    n, input_dim = x.shape
    hidden_dim = params["w_in"].shape[1]
    out_dim = params["layers"][-1][0].shape[1]
    n_pad = _round_up(n, LANE)
    d_pad = _round_up(input_dim, LANE)
    f_pad = _round_up(max(hidden_dim, out_dim), LANE)
    return {
        "n": n,
        "out_dim": out_dim,
        "x": _pad2d(x.astype(jnp.float32), n_pad, d_pad).astype(jnp.bfloat16),
        # TODO(synk): on v7x the adjacency (values in [0,1]) could be fp8 (e4m3).
        "adj": _pad2d(adj_norm.astype(jnp.float32), n_pad, n_pad).astype(jnp.bfloat16),
        "w_in": _pad2d(params["w_in"], d_pad, f_pad).astype(jnp.bfloat16),
        "b_in": _pad2d(params["b_in"], 1, f_pad).astype(jnp.float32),
        "w_stack": jnp.stack(
            [_pad2d(w, f_pad, f_pad) for w, _ in params["layers"]]).astype(jnp.bfloat16),
        "b_stack": jnp.stack(
            [_pad2d(b, 1, f_pad) for _, b in params["layers"]]).astype(jnp.float32),
    }


def base_gnn_forward(x=None, adj_norm=None, params=None, batch=None, num_graphs=None,
                     prepared=None, force_tiled=False):
    """Mirrors BaseGNN.forward(x, edge_index, batch) with JK='last', pool='mean'."""
    prep = prepared if prepared is not None else prepare_operands(x, adj_norm, params)
    n, out_dim = prep["n"], prep["out_dim"]
    n_pad = prep["adj"].shape[0]
    f_pad = prep["w_in"].shape[1]
    num_layers = prep["w_stack"].shape[0]

    batch_p, g_pad = None, 0
    if batch is not None:
        g = int(num_graphs)
        g_pad = _round_up(max(g, 1), SUBLANE)
        batch_p = jnp.full((1, n_pad), -1, dtype=jnp.int32)
        batch_p = batch_p.at[0, :n].set(batch.astype(jnp.int32))

    # Fused single-launch path only if the resident bf16 adjacency + activations fit
    # comfortably inside the generation-specific VMEM budget; otherwise tile.
    resident_bytes = 2 * n_pad * n_pad + 16 * n_pad * f_pad
    fused_ok = (not force_tiled) and (resident_bytes < _vmem_budget() // 2)

    if fused_ok:
        cp = pltpu.CompilerParams(vmem_limit_bytes=_vmem_budget())
        if batch_p is None:
            node_p = pl.pallas_call(
                functools.partial(gnn_fused_kernel, num_layers=num_layers,
                                  with_pool=False, num_graphs_padded=0),
                out_shape=jax.ShapeDtypeStruct((n_pad, f_pad), jnp.float32),
                in_specs=[_vmem_spec()] * 6,
                out_specs=_vmem_spec(),
                compiler_params=cp,
            )(prep["x"], prep["adj"], prep["w_in"], prep["b_in"],
              prep["w_stack"], prep["b_stack"])
            return node_p[:n, :out_dim]

        graph_p = pl.pallas_call(
            functools.partial(gnn_fused_kernel, num_layers=num_layers,
                              with_pool=True, num_graphs_padded=g_pad),
            out_shape=jax.ShapeDtypeStruct((g_pad, f_pad), jnp.float32),
            in_specs=[_vmem_spec()] * 7,
            out_specs=_vmem_spec(),
            compiler_params=cp,
        )(prep["x"], prep["adj"], prep["w_in"], prep["b_in"],
          prep["w_stack"], prep["b_stack"], batch_p)
        return graph_p[:int(num_graphs), :out_dim]

    # Row-tiled / K-streamed path for large N.
    node_p = _forward_tiled(prep)
    if batch_p is None:
        return node_p[:n, :out_dim]
    graph_p = pl.pallas_call(
        functools.partial(_pool_kernel, num_graphs_padded=g_pad),
        out_shape=jax.ShapeDtypeStruct((g_pad, f_pad), jnp.float32),
        in_specs=[_vmem_spec()] * 2, out_specs=_vmem_spec(),
        compiler_params=pltpu.CompilerParams(vmem_limit_bytes=_vmem_budget()),
    )(batch_p, node_p)
    return graph_p[:int(num_graphs), :out_dim]


def build_gcn_adj(edge_index, num_nodes):
    """Dense GCN-normalized adjacency with self loops (plain-JAX glue)."""
    src, dst = edge_index[0], edge_index[1]
    a = jnp.zeros((num_nodes, num_nodes), jnp.float32)
    a = a.at[dst, src].add(1.0)          # aggregate x[src] into node dst
    a = jnp.minimum(a, 1.0)              # TODO(synk): PyG add-aggr would count dup edges
    a = a + jnp.eye(num_nodes, dtype=jnp.float32)
    deg = a.sum(axis=1)
    d_inv_sqrt = jax.lax.rsqrt(jnp.maximum(deg, 1e-12))
    return d_inv_sqrt[:, None] * a * d_inv_sqrt[None, :]


def init_params(key, input_dim, hidden_dim, out_dim, num_layer):
    """Deterministic synthetic parameters matching BaseGNN.__init__ shapes."""
    dims = [hidden_dim] * (num_layer - 1) + [out_dim]
    keys = jax.random.split(key, 2 + 2 * num_layer)
    params = {
        "w_in": 0.1 * jax.random.normal(keys[0], (input_dim, hidden_dim), jnp.float32),
        "b_in": 0.1 * jax.random.normal(keys[1], (1, hidden_dim), jnp.float32),
        "layers": [],
    }
    d_in = hidden_dim
    for l, d_out in enumerate(dims):
        w = 0.1 * jax.random.normal(keys[2 + 2 * l], (d_in, d_out), jnp.float32)
        b = 0.1 * jax.random.normal(keys[3 + 2 * l], (1, d_out), jnp.float32)
        params["layers"].append((w, b))
        d_in = d_out
    return params


def reference_forward(x, adj, params):
    h = x @ params["w_in"] + params["b_in"]
    n_layers = len(params["layers"])
    for l, (w, b) in enumerate(params["layers"]):
        h = adj @ (h @ w) + b
        if l < n_layers - 1:
            h = _leaky_relu(h)
    return h


# --------------------------------- main -------------------------------------------- #

if __name__ == "__main__":
    key = jax.random.PRNGKey(0)
    k_x, k_e, k_p, k_x2, k_e2 = jax.random.split(key, 5)

    # ---- small demo graph (fused single-launch path) ----
    num_nodes, input_dim, hidden_dim, out_dim, num_layer, num_edges = 16, 32, 32, 32, 3, 40
    x = jax.random.normal(k_x, (num_nodes, input_dim), jnp.float32)
    edge_index = jax.random.randint(k_e, (2, num_edges), 0, num_nodes, dtype=jnp.int32)
    batch = jnp.concatenate([jnp.zeros((8,), jnp.int32), jnp.ones((8,), jnp.int32)])
    params = init_params(k_p, input_dim, hidden_dim, out_dim, num_layer)
    adj_norm = build_gcn_adj(edge_index, num_nodes)

    prep = prepare_operands(x, adj_norm, params)      # pad/cast/stack ONCE, reused below

    node_emb = jax.block_until_ready(base_gnn_forward(batch=None, prepared=prep))
    graph_emb = jax.block_until_ready(
        base_gnn_forward(batch=batch, num_graphs=2, prepared=prep))

    node_ref = reference_forward(x, adj_norm, params)
    one_hot = (batch[None, :] == jnp.arange(2)[:, None]).astype(jnp.float32)
    graph_ref = (one_hot / one_hot.sum(axis=1, keepdims=True)) @ node_ref

    assert node_emb.shape == (num_nodes, out_dim)
    assert graph_emb.shape == (2, out_dim)
    assert jnp.allclose(node_emb, node_ref, atol=5e-2, rtol=5e-2)
    assert jnp.allclose(graph_emb, graph_ref, atol=5e-2, rtol=5e-2)

    # ---- larger graph: exercise the row-tiled / K-streamed adjacency path ----
    n2 = 300
    x2 = jax.random.normal(k_x2, (n2, input_dim), jnp.float32)
    e2 = jax.random.randint(k_e2, (2, 1200), 0, n2, dtype=jnp.int32)
    batch2 = (jnp.arange(n2) >= n2 // 2).astype(jnp.int32)
    adj2 = build_gcn_adj(e2, n2)
    prep2 = prepare_operands(x2, adj2, params)
    graph2 = jax.block_until_ready(
        base_gnn_forward(batch=batch2, num_graphs=2, prepared=prep2, force_tiled=True))
    node_ref2 = reference_forward(x2, adj2, params)
    oh2 = (batch2[None, :] == jnp.arange(2)[:, None]).astype(jnp.float32)
    graph_ref2 = (oh2 / oh2.sum(axis=1, keepdims=True)) @ node_ref2
    assert graph2.shape == (2, out_dim)
    assert jnp.allclose(graph2, graph_ref2, atol=6e-2, rtol=6e-2)

    print("KERNEL_OK")
</pallas_src>

<mosaic_0001>
module attributes {stable_mosaic.version = 11 : i64} {
  func.func @gnn_fused_kernel(%arg0: memref<128x128xbf16, #tpu.memory_space<vmem>>, %arg1: memref<128x128xbf16, #tpu.memory_space<vmem>>, %arg2: memref<128x128xbf16, #tpu.memory_space<vmem>>, %arg3: memref<1x128xf32, #tpu.memory_space<vmem>>, %arg4: memref<3x128x128xbf16, #tpu.memory_space<vmem>>, %arg5: memref<3x1x128xf32, #tpu.memory_space<vmem>>, %arg6: memref<128x128xf32, #tpu.memory_space<vmem>>) attributes {dimension_semantics = [], scalar_prefetch = 0 : i64, scratch_operands = 0 : i64, tpu.core_type = #tpu.core_type<tc>} {
    %c0 = arith.constant 0 : index
    %c0_0 = arith.constant 0 : index
    %0 = vector.load %arg0[%c0, %c0_0] : memref<128x128xbf16, #tpu.memory_space<vmem>>, vector<128x128xbf16>
    %c0_1 = arith.constant 0 : index
    %c0_2 = arith.constant 0 : index
    %1 = vector.load %arg2[%c0_1, %c0_2] : memref<128x128xbf16, #tpu.memory_space<vmem>>, vector<128x128xbf16>
    %cst = arith.constant dense<0.000000e+00> : vector<128x128xf32>
    %2 = tpu.matmul %0, %1, %cst {dimension_numbers = #tpu.dot_dimension_numbers<[1], [0], [0], [1], [0, 0, 1, 1], [], []>} : vector<128x128xbf16>, vector<128x128xbf16>, vector<128x128xf32> -> vector<128x128xf32>
    %c0_3 = arith.constant 0 : index
    %c0_4 = arith.constant 0 : index
    %3 = vector.load %arg3[%c0_3, %c0_4] : memref<1x128xf32, #tpu.memory_space<vmem>>, vector<1x128xf32>
    %4 = vector.broadcast %3 : vector<1x128xf32> to vector<128x128xf32>
    %5 = arith.addf %2, %4 : vector<128x128xf32>
    %6 = arith.truncf %5 : vector<128x128xf32> to vector<128x128xbf16>
    %c0_5 = arith.constant 0 : index
    %c0_6 = arith.constant 0 : index
    %7 = vector.load %arg1[%c0_5, %c0_6] : memref<128x128xbf16, #tpu.memory_space<vmem>>, vector<128x128xbf16>
    %c0_7 = arith.constant 0 : index
    %c0_8 = arith.constant 0 : index
    %c0_9 = arith.constant 0 : index
    %8 = vector.load %arg4[%c0_7, %c0_8, %c0_9] : memref<3x128x128xbf16, #tpu.memory_space<vmem>>, vector<1x128x128xbf16>
    %9 = vector.shape_cast %8 : vector<1x128x128xbf16> to vector<128x128xbf16>
    %cst_10 = arith.constant dense<0.000000e+00> : vector<128x128xf32>
    %10 = tpu.matmul %6, %9, %cst_10 {dimension_numbers = #tpu.dot_dimension_numbers<[1], [0], [0], [1], [0, 0, 1, 1], [], []>} : vector<128x128xbf16>, vector<128x128xbf16>, vector<128x128xf32> -> vector<128x128xf32>
    %11 = arith.truncf %10 : vector<128x128xf32> to vector<128x128xbf16>
    %cst_11 = arith.constant dense<0.000000e+00> : vector<128x128xf32>
    %12 = tpu.matmul %7, %11, %cst_11 {dimension_numbers = #tpu.dot_dimension_numbers<[1], [0], [0], [1], [0, 0, 1, 1], [], []>} : vector<128x128xbf16>, vector<128x128xbf16>, vector<128x128xf32> -> vector<128x128xf32>
    %c0_12 = arith.constant 0 : index
    %c0_13 = arith.constant 0 : index
    %c0_14 = arith.constant 0 : index
    %13 = vector.load %arg5[%c0_12, %c0_13, %c0_14] : memref<3x1x128xf32, #tpu.memory_space<vmem>>, vector<1x1x128xf32>
    %14 = vector.shape_cast %13 : vector<1x1x128xf32> to vector<1x128xf32>
    %15 = vector.broadcast %14 : vector<1x128xf32> to vector<128x128xf32>
    %16 = arith.addf %12, %15 : vector<128x128xf32>
    %cst_15 = arith.constant 0.000000e+00 : f32
    %17 = vector.broadcast %cst_15 : f32 to vector<128x128xf32>
    %18 = arith.cmpf oge, %16, %17 : vector<128x128xf32>
    %cst_16 = arith.constant 0.00999999977 : f32
    %19 = vector.broadcast %cst_16 : f32 to vector<128x128xf32>
    %20 = arith.mulf %19, %16 : vector<128x128xf32>
    %21 = arith.select %18, %16, %20 : vector<128x128xi1>, vector<128x128xf32>
    %22 = arith.truncf %21 : vector<128x128xf32> to vector<128x128xbf16>
    %c1 = arith.constant 1 : index
    %c0_17 = arith.constant 0 : index
    %c0_18 = arith.constant 0 : index
    %23 = vector.load %arg4[%c1, %c0_17, %c0_18] : memref<3x128x128xbf16, #tpu.memory_space<vmem>>, vector<1x128x128xbf16>
    %24 = vector.shape_cast %23 : vector<1x128x128xbf16> to vector<128x128xbf16>
    %cst_19 = arith.constant dense<0.000000e+00> : vector<128x128xf32>
    %25 = tpu.matmul %22, %24, %cst_19 {dimension_numbers = #tpu.dot_dimension_numbers<[1], [0], [0], [1], [0, 0, 1, 1], [], []>} : vector<128x128xbf16>, vector<128x128xbf16>, vector<128x128xf32> -> vector<128x128xf32>
    %26 = arith.truncf %25 : vector<128x128xf32> to vector<128x128xbf16>
    %cst_20 = arith.constant dense<0.000000e+00> : vector<128x128xf32>
    %27 = tpu.matmul %7, %26, %cst_20 {dimension_numbers = #tpu.dot_dimension_numbers<[1], [0], [0], [1], [0, 0, 1, 1], [], []>} : vector<128x128xbf16>, vector<128x128xbf16>, vector<128x128xf32> -> vector<128x128xf32>
    %c1_21 = arith.constant 1 : index
    %c0_22 = arith.constant 0 : index
    %c0_23 = arith.constant 0 : index
    %28 = vector.load %arg5[%c1_21, %c0_22, %c0_23] : memref<3x1x128xf32, #tpu.memory_space<vmem>>, vector<1x1x128xf32>
    %29 = vector.shape_cast %28 : vector<1x1x128xf32> to vector<1x128xf32>
    %30 = vector.broadcast %29 : vector<1x128xf32> to vector<128x128xf32>
    %31 = arith.addf %27, %30 : vector<128x128xf32>
    %cst_24 = arith.constant 0.000000e+00 : f32
    %32 = vector.broadcast %cst_24 : f32 to vector<128x128xf32>
    %33 = arith.cmpf oge, %31, %32 : vector<128x128xf32>
    %cst_25 = arith.constant 0.00999999977 : f32
    %34 = vector.broadcast %cst_25 : f32 to vector<128x128xf32>
    %35 = arith.mulf %34, %31 : vector<128x128xf32>
    %36 = arith.select %33, %31, %35 : vector<128x128xi1>, vector<128x128xf32>
    %37 = arith.truncf %36 : vector<128x128xf32> to vector<128x128xbf16>
    %c2 = arith.constant 2 : index
    %c0_26 = arith.constant 0 : index
    %c0_27 = arith.constant 0 : index
    %38 = vector.load %arg4[%c2, %c0_26, %c0_27] : memref<3x128x128xbf16, #tpu.memory_space<vmem>>, vector<1x128x128xbf16>
    %39 = vector.shape_cast %38 : vector<1x128x128xbf16> to vector<128x128xbf16>
    %cst_28 = arith.constant dense<0.000000e+00> : vector<128x128xf32>
    %40 = tpu.matmul %37, %39, %cst_28 {dimension_numbers = #tpu.dot_dimension_numbers<[1], [0], [0], [1], [0, 0, 1, 1], [], []>} : vector<128x128xbf16>, vector<128x128xbf16>, vector<128x128xf32> -> vector<128x128xf32>
    %41 = arith.truncf %40 : vector<128x128xf32> to vector<128x128xbf16>
    %cst_29 = arith.constant dense<0.000000e+00> : vector<128x128xf32>
    %42 = tpu.matmul %7, %41, %cst_29 {dimension_numbers = #tpu.dot_dimension_numbers<[1], [0], [0], [1], [0, 0, 1, 1], [], []>} : vector<128x128xbf16>, vector<128x128xbf16>, vector<128x128xf32> -> vector<128x128xf32>
    %c2_30 = arith.constant 2 : index
    %c0_31 = arith.constant 0 : index
    %c0_32 = arith.constant 0 : index
    %43 = vector.load %arg5[%c2_30, %c0_31, %c0_32] : memref<3x1x128xf32, #tpu.memory_space<vmem>>, vector<1x1x128xf32>
    %44 = vector.shape_cast %43 : vector<1x1x128xf32> to vector<1x128xf32>
    %45 = vector.broadcast %44 : vector<1x128xf32> to vector<128x128xf32>
    %46 = arith.addf %42, %45 : vector<128x128xf32>
    %c0_33 = arith.constant 0 : index
    %c0_34 = arith.constant 0 : index
    %47 = vector.load %arg6[%c0_33, %c0_34] : memref<128x128xf32, #tpu.memory_space<vmem>>, vector<128x128xf32>
    tpu.vector_store %arg6[%c0_33, %c0_34], %46 {strides = array<i32>} : memref<128x128xf32, #tpu.memory_space<vmem>>, vector<128x128xf32>,
    return
  }
}

</mosaic_0001>

<bundles_post_ra>
// kernel: tpu_custom_call.1
= control target key start
LH: loop header
LB: loop body
LE: loop exit
PB: predicated region body
PF: predicated region fallthrough
CT: control target
= control target key end

     0   :  { %11 = vsyncpa [#allocation3], 0  ;;  %s2153_s0 = inlined_call_operand.hbm [shape: bf16[128,128], index: 0, kind: input, shape index: {}]   ;;  %s2154_s1 = inlined_call_operand.hbm [shape: bf16[128,128], index: 1, kind: input, shape index: {}]   ;;  %s2155_s2 = inlined_call_operand.hbm [shape: bf16[128,128], index: 2, kind: input, shape index: {}]   ;;  %s2156_s3 = inlined_call_operand.vmem [shape: f32[1,128], index: 3, kind: input, shape index: {}]   ;;  %s2157_s4 = inlined_call_operand.hbm [shape: bf16[3,128,128], index: 4, kind: input, shape index: {}]   ;;  %s2158_s5 = inlined_call_operand.vmem [shape: f32[3,1,128], index: 5, kind: input, shape index: {}]   ;;  %s2159_s6 = inlined_call_operand.hbm [shape: f32[128,128], index: 6, kind: output, shape index: {}]  }
   0x1   :  { %12 = vsyncpa [#allocation6], 0 }
   0x2   :  { %13 = vsyncpa [#allocation9], 0 }
   0x3   :  { %14 = vsyncpa [#allocation4], 0  ;;  %s1935_s21 = smov [#allocation5]   ;;  %s1936_s23 = smov [#allocation2]  }
   0x4   :  { %s32_s22 = sshll.u32 %s1935_s21, 4  ;;  %s20_s24 = sshll.u32 %s1936_s23, 4  ;;  %s33_s22 = int_to_ptr.vmem [resolvable:$true] %s32_s22  ;;  %s1979_s24 = int_to_ptr.vmem [resolvable:$true] %s20_s24 }
   0x5   :  { %s1817_s27 = scalar_lea.hbm %s2154_s1, 1024 }
   0x6   :  { %p1818_p0 = scmp.ne.s32.totalorder %s2154_s1, %s1817_s27  ;;  %p1821_p1 = scmp.lt.u32.totalorder %s1817_s27, %s2154_s1 }
   0x8   :  { %p1823_p2 = pnand %p1821_p1, %p1818_p0 }
   0xa   :  { %1826 = shalt.err (!%p1823_p2)
}
   0xb   :  { %s1827_s8 = scalar_lea.vmem %s33_s22, 1024  ;;  %p1832_p4 = scmp.lt.s32.totalorder %s33_s22, %s33_s22 }
   0xc   :  { %p1828_p3 = scmp.ne.s32.totalorder %s33_s22, %s1827_s8  ;;  %p1833_p5 = scmp.lt.s32.totalorder %s1827_s8, %s1827_s8 }
   0xe   :  { %p1834_p6 = por %p1833_p5, %p1832_p4 }
  0x10   :  { %p1835_p7 = pnand %p1834_p6, %p1828_p3 }
  0x12   :  { %1838 = shalt.err (!%p1835_p7)
}
  0x13   :  { %s1937_s9 = smov 64   ;;  %s1938_s10 = smov 4  }
  0x14   :  { %38 = dma.hbm_to_vmem [thread:$0]  %s2154_s1, 1024, %s33_s22, [#allocation6], %s1937_s9, %s1937_s9, %s1938_s10  }
  0x15   :  { %s1839_s15 = scalar_lea.hbm %s2153_s0, 1024 }
  0x16   :  { %p1840_p8 = scmp.ne.s32.totalorder %s2153_s0, %s1839_s15  ;;  %p1843_p9 = scmp.lt.u32.totalorder %s1839_s15, %s2153_s0 }
  0x18   :  { %p1845_p10 = pnand %p1843_p9, %p1840_p8 }
  0x1a   :  { %1848 = shalt.err (!%p1845_p10)
}
  0x1b   :  { %s1849_s20 = scalar_lea.vmem %s1979_s24, 1024  ;;  %p1854_p12 = scmp.lt.s32.totalorder %s1979_s24, %s1979_s24 }
  0x1c   :  { %p1850_p11 = scmp.ne.s32.totalorder %s1979_s24, %s1849_s20  ;;  %p1855_p13 = scmp.lt.s32.totalorder %s1849_s20, %s1849_s20 }
  0x1e   :  { %p1856_p0 = por %p1855_p13, %p1854_p12 }
  0x20   :  { %p1857_p1 = pnand %p1856_p0, %p1850_p11 }
  0x22   :  { %1860 = shalt.err (!%p1857_p1)
}
  0x23   :  { %26 = dma.hbm_to_vmem [thread:$0]  %s2153_s0, 1024, %s1979_s24, [#allocation3], %s1937_s9, %s1937_s9, %s1938_s10  }
  0x24   :  { %s1939_s22 = smov [#allocation7]   ;;  %s1940_s25 = smov [#allocation8]  }
  0x25   :  { %s44_s23 = sshll.u32 %s1939_s22, 4  ;;  %s58_s26 = sshll.u32 %s1940_s25, 4  ;;  %s45_s23 = int_to_ptr.vmem [resolvable:$true] %s44_s23  ;;  %s2016_s26 = int_to_ptr.vmem [resolvable:$true] %s58_s26 }
  0x26   :  { %s1861_s29 = scalar_lea.hbm %s2155_s2, 1024 }
  0x27   :  { %p1862_p2 = scmp.ne.s32.totalorder %s2155_s2, %s1861_s29  ;;  %p1865_p3 = scmp.lt.u32.totalorder %s1861_s29, %s2155_s2 }
  0x29   :  { %p1867_p4 = pnand %p1865_p3, %p1862_p2 }
  0x2b   :  { %1870 = shalt.err (!%p1867_p4)
}
  0x2c   :  { %s1871_s0 = scalar_lea.vmem %s45_s23, 1024  ;;  %p1876_p6 = scmp.lt.s32.totalorder %s45_s23, %s45_s23 }
  0x2d   :  { %p1872_p5 = scmp.ne.s32.totalorder %s45_s23, %s1871_s0  ;;  %p1877_p7 = scmp.lt.s32.totalorder %s1871_s0, %s1871_s0 }
  0x2f   :  { %p1878_p8 = por %p1877_p7, %p1876_p6 }
  0x31   :  { %p1879_p9 = pnand %p1878_p8, %p1872_p5 }
  0x33   :  { %1882 = shalt.err (!%p1879_p9)
}
  0x34   :  { %50 = dma.hbm_to_vmem [thread:$0]  %s2155_s2, 1024, %s45_s23, [#allocation6], %s1937_s9, %s1937_s9, %s1938_s10  }
  0x35   :  { %s1883_s15 = scalar_lea.hbm %s2157_s4, 3072 }
  0x36   :  { %p1884_p10 = scmp.ne.s32.totalorder %s2157_s4, %s1883_s15  ;;  %p1887_p11 = scmp.lt.u32.totalorder %s1883_s15, %s2157_s4 }
  0x38   :  { %p1889_p12 = pnand %p1887_p11, %p1884_p10 }
  0x3a   :  { %1892 = shalt.err (!%p1889_p12)
}
  0x3b   :  { %s1893_s20 = scalar_lea.vmem %s2016_s26, 3072  ;;  %p1898_p0 = scmp.lt.s32.totalorder %s2016_s26, %s2016_s26 }
  0x3c   :  { %p1894_p13 = scmp.ne.s32.totalorder %s2016_s26, %s1893_s20  ;;  %p1899_p1 = scmp.lt.s32.totalorder %s1893_s20, %s1893_s20 }
  0x3e   :  { %p1900_p2 = por %p1899_p1, %p1898_p0 }
  0x40   :  { %p1901_p3 = pnand %p1900_p2, %p1894_p13 }
  0x42   :  { %1904 = shalt.err (!%p1901_p3)
}
  0x43   :  { %64 = dma.hbm_to_vmem [thread:$0]  %s2157_s4, 3072, %s2016_s26, [#allocation9], %s1937_s9, %s1937_s9, %s1938_s10  }
  0x44   :  { %1927 = dma.done.wait [#allocation3], 1024  }
  0x45   :  { %1928 = vsyncadd [#allocation3], 4294966272 }
  0x46   :  { %1929 = dma.done.wait [#allocation6], 2048  }
  0x47   :  { %1930 = vsyncadd [#allocation6], 4294965248 }
  0x48   :  { %1931 = dma.done.wait [#allocation9], 3072  }
  0x49   :  { %1932 = vsyncadd [#allocation9], 4294964224  ;;  %v1769_v0 = vld [vmem:[#allocation7] sm:$0xff]   ;;  %v1770_v1 = vld [vmem:[#allocation7 + $0x8] sm:$0xff]  }
  0x4a   :  { %1520 = vmatprep.subr.bf16.mxu0 %v1769_v0  ;;  %v1771_v2 = vld [vmem:[#allocation7 + $0x10] sm:$0xff]   ;;  %v1772_v3 = vld [vmem:[#allocation7 + $0x18] sm:$0xff]   ;;  %v1777_v4 = vld [vmem:[#allocation2] sm:$0xff]  }
  0x4b   :  { %1521 = vmatpush3.bf16.msra.mxu0 %v1769_v0  ;;  %1536 = vmatprep.mubr.bf16.mxu0 %v1777_v4  ;;  %v1773_v5 = vld [vmem:[#allocation7 + $0x20] sm:$0xff]   ;;  %v1774_v6 = vld [vmem:[#allocation7 + $0x28] sm:$0xff]   ;;  %v1775_v9 = vld [vmem:[#allocation7 + $0x30] sm:$0xff]  }
  0x4c   :  { %1522 = vmatprep.subr.bf16.mxu0 %v1770_v1  ;;  %v1785_v7 = vld [vmem:[#allocation8] sm:$0xff]   ;;  %v1786_v8 = vld [vmem:[#allocation8 + $0x8] sm:$0xff]   ;;  %v1787_v10 = vld [vmem:[#allocation8 + $0x10] sm:$0xff]  }
  0x4d   :  { %1552 = vmatprep.subr.bf16.mxu1 %v1785_v7  ;;  %v1776_v11 = vld [vmem:[#allocation7 + $0x38] sm:$0xff]   ;;  %v1789_v13 = vld [vmem:[#allocation8 + $0x20] sm:$0xff]   ;;  %v1778_v14 = vld [vmem:[#allocation2 + $0x8] sm:$0xff]  }
  0x4e   :  { %1553 = vmatpush3.bf16.msra.mxu1 %v1785_v7  ;;  %v1788_v12 = vld [vmem:[#allocation8 + $0x18] sm:$0xff]   ;;  %v1779_v15 = vld [vmem:[#allocation2 + $0x10] sm:$0xff]   ;;  %v1790_v16 = vld [vmem:[#allocation8 + $0x28] sm:$0xff]  }
  0x4f   :  { %1523 = vmatpush3.bf16.msra.mxu0 %v1770_v1  ;;  %1554 = vmatprep.subr.bf16.mxu1 %v1786_v8  ;;  %v1780_v17 = vld [vmem:[#allocation2 + $0x18] sm:$0xff]   ;;  %v1781_v18 = vld [vmem:[#allocation2 + $0x20] sm:$0xff]   ;;  %v1782_v19 = vld [vmem:[#allocation2 + $0x28] sm:$0xff]  }
  0x50   :  { %1524 = vmatprep.subr.bf16.mxu0 %v1771_v2  ;;  %v1783_v20 = vld [vmem:[#allocation2 + $0x30] sm:$0xff]   ;;  %v1784_v21 = vld [vmem:[#allocation2 + $0x38] sm:$0xff]   ;;  %v1354_v25 = vld [vmem:[%s2156_s3] ss:$0 sm:$0xff] }
  0x51   :  { %v1791_v22 = vld [vmem:[#allocation8 + $0x30] sm:$0xff]   ;;  %v1792_v23 = vld [vmem:[#allocation8 + $0x38] sm:$0xff]   ;;  %v2056_v1 = vld [vmem:[#allocation5] sm:$0xff]  }
  0x52   :  { %1555 = vmatpush3.bf16.msra.mxu1 %v1786_v8  ;;  %v1803_v4 = vld [vmem:[#allocation8 + $0x50] sm:$0xff]  }
  0x53   :  { %1525 = vmatpush3.bf16.msra.mxu0 %v1771_v2  ;;  %1556 = vmatprep.subr.bf16.mxu1 %v1787_v10  ;;  %v1801_v2 = vld [vmem:[#allocation8 + $0x40] sm:$0xff]  }
  0x54   :  { %1526 = vmatprep.subr.bf16.mxu0 %v1772_v3 }
  0x56   :  { %1557 = vmatpush3.bf16.msra.mxu1 %v1787_v10 }
  0x57   :  { %1527 = vmatpush3.bf16.msra.mxu0 %v1772_v3  ;;  %1558 = vmatprep.subr.bf16.mxu1 %v1788_v12  ;;  %v1802_v3 = vld [vmem:[#allocation8 + $0x48] sm:$0xff]  }
  0x58   :  { %1528 = vmatprep.subr.bf16.mxu0 %v1773_v5 }
  0x5a   :  { %1559 = vmatpush3.bf16.msra.mxu1 %v1788_v12 }
  0x5b   :  { %1529 = vmatpush3.bf16.msra.mxu0 %v1773_v5  ;;  %1560 = vmatprep.subr.bf16.mxu1 %v1789_v13  ;;  %v1804_v5 = vld [vmem:[#allocation8 + $0x58] sm:$0xff]  }
  0x5c   :  { %1530 = vmatprep.subr.bf16.mxu0 %v1774_v6 }
  0x5e   :  { %1561 = vmatpush3.bf16.msra.mxu1 %v1789_v13 }
  0x5f   :  { %1531 = vmatpush3.bf16.msra.mxu0 %v1774_v6  ;;  %1562 = vmatprep.subr.bf16.mxu1 %v1790_v16  ;;  %v1805_v6 = vld [vmem:[#allocation8 + $0x60] sm:$0xff]  }
  0x60   :  { %1532 = vmatprep.subr.bf16.mxu0 %v1775_v9 }
  0x62   :  { %1563 = vmatpush3.bf16.msra.mxu1 %v1790_v16 }
  0x63   :  { %1533 = vmatpush3.bf16.msra.mxu0 %v1775_v9  ;;  %1564 = vmatprep.subr.bf16.mxu1 %v1791_v22 }
  0x64   :  { %1534 = vmatprep.subr.bf16.mxu0 %v1776_v11 }
  0x66   :  { %1565 = vmatpush3.bf16.msra.mxu1 %v1791_v22 }
  0x67   :  { %1535 = vmatpush3.bf16.msra.mxu0 %v1776_v11  ;;  %1566 = vmatprep.subr.bf16.mxu1 %v1792_v23 }
  0x6a   :  { %1537 = vmatmul.mubr.bf16.vlgmr.msra.gmra.mrb[0].mxu0 %v1778_v14  ;;  %1567 = vmatpush3.bf16.msra.mxu1 %v1792_v23 }
  0x6b   :  { %1540 = vmatprep.mubr.bf16.mxu0 %v1779_v15  ;;  %1616 = vmatprep.subr.bf16.mxu1 %v1801_v2 }
  0x72   :  { %1541 = vmatmul.mubr.bf16.gmra.mrb[4].mxu0 %v1780_v17 }
  0x73   :  { %1544 = vmatprep.mubr.bf16.mxu0 %v1781_v18 }
  0x7a   :  { %1545 = vmatmul.mubr.bf16.gmra.mrb[8].mxu0 %v1782_v19 }
  0x7b   :  { %1548 = vmatprep.mubr.bf16.mxu0 %v1783_v20 }
  0x82   :  { %1549 = vmatmul.mubr.bf16.gmra.mrb[12].mxu0 %v1784_v21 }
  0x83   :  { %1600 = vmatprep.mubr.bf16.mxu0 %v2056_v1 }
 0x13d   :  { %v1538_v24 = vpop.f32.mrb[0].mxu0 }
 0x13e   :  { %v249_v26 = vpop.f32.mrb[1].mxu0  ;;  %v258_v28 = vadd.f32 %v1538_v24, %v1354_v25 }
 0x13f   :  { %v1539_v27 = vpop.f32.mrb[2].mxu0  ;;  %v250_v31 = vadd.f32 %v1354_v25, %v249_v26 }
 0x140   :  { %v261_v29 = vadd.f32 %v1539_v27, %v1354_v25  ;;  %v252_v30 = vpop.f32.mrb[3].mxu0 }
 0x141   :  { %v253_v32 = vadd.f32 %v1354_v25, %v252_v30 }
 0x142   :  { %v313_v33 = vpack.c.bf16 %v261_v29, %v258_v28 }
 0x143   :  { %v312_v34 = vpack.c.bf16 %v253_v32, %v250_v31  ;;  %v2059_v31 = vld [vmem:[#allocation5 + $0x8] sm:$0xff]   ;;  %v2061_v32 = vld [vmem:[#allocation5 + $0x10] sm:$0xff]  }
 0x145   :  { %v1542_v35 = vpop.f32.mrb[4].mxu0  ;;  %1568 = vmatprep.mubr.bf16.mxu1 %v312_v34  ;;  %v2067_v34 = vld [vmem:[#allocation5 + $0x20] sm:$0xff]  }
 0x146   :  { %v265_v36 = vpop.f32.mrb[5].mxu0  ;;  %1569 = vmatmul.mubr.bf16.vlgmr.msra.gmra.mrb[0].mxu1 %v313_v33  ;;  %v274_v38 = vadd.f32 %v1542_v35, %v1354_v25  ;;  %v2065_v33 = vld [vmem:[#allocation5 + $0x18] sm:$0xff]   ;;  %v2071_v35 = vld [vmem:[#allocation5 + $0x28] sm:$0xff]  }
 0x147   :  { %v1543_v37 = vpop.f32.mrb[6].mxu0  ;;  %v266_v41 = vadd.f32 %v1354_v25, %v265_v36  ;;  %1617 = vmatpush3.bf16.msra.mxu1 %v1801_v2  ;;  %v2073_v36 = vld [vmem:[#allocation5 + $0x30] sm:$0xff]  }
 0x148   :  { %v277_v39 = vadd.f32 %v1543_v37, %v1354_v25  ;;  %v268_v40 = vpop.f32.mrb[7].mxu0  ;;  %1618 = vmatprep.subr.bf16.mxu1 %v1802_v3  ;;  %v2077_v37 = vld [vmem:[#allocation5 + $0x38] sm:$0xff]  }
 0x149   :  { %v269_v42 = vadd.f32 %v1354_v25, %v268_v40  ;;  %v1808_v40 = vld [vmem:[#allocation8 + $0x78] sm:$0xff]  }
 0x14a   :  { %v315_v43 = vpack.c.bf16 %v277_v39, %v274_v38  ;;  %v1806_v38 = vld [vmem:[#allocation8 + $0x68] sm:$0xff]   ;;  %v1807_v39 = vld [vmem:[#allocation8 + $0x70] sm:$0xff]  }
 0x14b   :  { %v314_v44 = vpack.c.bf16 %v269_v42, %v266_v41  ;;  %1619 = vmatpush3.bf16.msra.mxu1 %v1802_v3  ;;  %v2084_v41 = vld [vmem:[%s2158_s5] ss:$0 sm:$0xff] }
 0x14c   :  { %1620 = vmatprep.subr.bf16.mxu1 %v1803_v4 }
 0x14d   :  { %v1546_v45 = vpop.f32.mrb[8].mxu0  ;;  %1572 = vmatprep.mubr.bf16.mxu1 %v314_v44 }
 0x14e   :  { %v281_v46 = vpop.f32.mrb[9].mxu0  ;;  %1573 = vmatmul.mubr.bf16.gmra.mrb[4].mxu1 %v315_v43  ;;  %v290_v48 = vadd.f32 %v1546_v45, %v1354_v25 }
 0x14f   :  { %v1547_v47 = vpop.f32.mrb[10].mxu0  ;;  %v282_v51 = vadd.f32 %v1354_v25, %v281_v46  ;;  %1621 = vmatpush3.bf16.msra.mxu1 %v1803_v4 }
 0x150   :  { %v293_v49 = vadd.f32 %v1547_v47, %v1354_v25  ;;  %v284_v50 = vpop.f32.mrb[11].mxu0  ;;  %1622 = vmatprep.subr.bf16.mxu1 %v1804_v5 }
 0x151   :  { %v285_v52 = vadd.f32 %v1354_v25, %v284_v50 }
 0x152   :  { %v317_v53 = vpack.c.bf16 %v293_v49, %v290_v48 }
 0x153   :  { %v316_v54 = vpack.c.bf16 %v285_v52, %v282_v51  ;;  %1623 = vmatpush3.bf16.msra.mxu1 %v1804_v5 }
 0x154   :  { %1624 = vmatprep.subr.bf16.mxu1 %v1805_v6 }
 0x155   :  { %v1550_v55 = vpop.f32.mrb[12].mxu0  ;;  %1576 = vmatprep.mubr.bf16.mxu1 %v316_v54 }
 0x156   :  { %v297_v56 = vpop.f32.mrb[13].mxu0  ;;  %1577 = vmatmul.mubr.bf16.gmra.mrb[8].mxu1 %v317_v53  ;;  %v306_v58 = vadd.f32 %v1550_v55, %v1354_v25 }
 0x157   :  { %v1551_v57 = vpop.f32.mrb[14].mxu0  ;;  %v298_v61 = vadd.f32 %v1354_v25, %v297_v56  ;;  %1625 = vmatpush3.bf16.msra.mxu1 %v1805_v6 }
 0x158   :  { %v309_v59 = vadd.f32 %v1551_v57, %v1354_v25  ;;  %v300_v60 = vpop.f32.mrb[15].mxu0  ;;  %1626 = vmatprep.subr.bf16.mxu1 %v1806_v38 }
 0x159   :  { %v301_v62 = vadd.f32 %v1354_v25, %v300_v60 }
 0x15a   :  { %v319_v63 = vpack.c.bf16 %v309_v59, %v306_v58 }
 0x15b   :  { %v318_v0 = vpack.c.bf16 %v301_v62, %v298_v61  ;;  %1627 = vmatpush3.bf16.msra.mxu1 %v1806_v38 }
 0x15c   :  { %1628 = vmatprep.subr.bf16.mxu1 %v1807_v39 }
 0x15d   :  { %1580 = vmatprep.mubr.bf16.mxu1 %v318_v0 }
 0x15e   :  { %1581 = vmatmul.mubr.bf16.gmra.mrb[12].mxu1 %v319_v63 }
 0x15f   :  { %1629 = vmatpush3.bf16.msra.mxu1 %v1807_v39 }
 0x160   :  { %1630 = vmatprep.subr.bf16.mxu1 %v1808_v40 }
 0x163   :  { %1631 = vmatpush3.bf16.msra.mxu1 %v1808_v40 }
 0x219   :  { %v1570_v7 = vpop.f32.mrb[0].mxu1 }
 0x21a   :  { %v434_v8 = vpop.f32.mrb[1].mxu1 }
 0x21b   :  { %v1571_v9 = vpop.f32.mrb[2].mxu1 }
 0x21c   :  { %v498_v10 = vpack.c.bf16 %v1571_v9, %v1570_v7  ;;  %v437_v11 = vpop.f32.mrb[3].mxu1 }
 0x21d   :  { %v497_v12 = vpack.c.bf16 %v437_v11, %v434_v8 }
 0x21f   :  { %1584 = vmatprep.subr.bf16.mxu0 %v497_v12 }
 0x220   :  { %1585 = vmatpush3.bf16.msra.mxu0 %v497_v12 }
 0x221   :  { %v1574_v13 = vpop.f32.mrb[4].mxu1  ;;  %1586 = vmatprep.subr.bf16.mxu0 %v498_v10 }
 0x222   :  { %v450_v14 = vpop.f32.mrb[5].mxu1 }
 0x223   :  { %v1575_v15 = vpop.f32.mrb[6].mxu1 }
 0x224   :  { %v500_v16 = vpack.c.bf16 %v1575_v15, %v1574_v13  ;;  %v453_v17 = vpop.f32.mrb[7].mxu1  ;;  %1587 = vmatpush3.bf16.msra.mxu0 %v498_v10 }
 0x225   :  { %v499_v18 = vpack.c.bf16 %v453_v17, %v450_v14 }
 0x227   :  { %1588 = vmatprep.subr.bf16.mxu0 %v499_v18 }
 0x228   :  { %1589 = vmatpush3.bf16.msra.mxu0 %v499_v18 }
 0x229   :  { %v1578_v19 = vpop.f32.mrb[8].mxu1  ;;  %1590 = vmatprep.subr.bf16.mxu0 %v500_v16 }
 0x22a   :  { %v466_v20 = vpop.f32.mrb[9].mxu1 }
 0x22b   :  { %v1579_v21 = vpop.f32.mrb[10].mxu1 }
 0x22c   :  { %v502_v22 = vpack.c.bf16 %v1579_v21, %v1578_v19  ;;  %v469_v23 = vpop.f32.mrb[11].mxu1  ;;  %1591 = vmatpush3.bf16.msra.mxu0 %v500_v16 }
 0x22d   :  { %v501_v24 = vpack.c.bf16 %v469_v23, %v466_v20 }
 0x22f   :  { %1592 = vmatprep.subr.bf16.mxu0 %v501_v24 }
 0x230   :  { %1593 = vmatpush3.bf16.msra.mxu0 %v501_v24 }
 0x231   :  { %v1582_v25 = vpop.f32.mrb[12].mxu1  ;;  %1594 = vmatprep.subr.bf16.mxu0 %v502_v22 }
 0x232   :  { %v482_v26 = vpop.f32.mrb[13].mxu1 }
 0x233   :  { %v1583_v27 = vpop.f32.mrb[14].mxu1 }
 0x234   :  { %v504_v28 = vpack.c.bf16 %v1583_v27, %v1582_v25  ;;  %v485_v29 = vpop.f32.mrb[15].mxu1  ;;  %1595 = vmatpush3.bf16.msra.mxu0 %v502_v22 }
 0x235   :  { %v503_v30 = vpack.c.bf16 %v485_v29, %v482_v26 }
 0x237   :  { %1596 = vmatprep.subr.bf16.mxu0 %v503_v30 }
 0x238   :  { %1597 = vmatpush3.bf16.msra.mxu0 %v503_v30 }
 0x239   :  { %1598 = vmatprep.subr.bf16.mxu0 %v504_v28 }
 0x23c   :  { %1599 = vmatpush3.bf16.msra.mxu0 %v504_v28 }
 0x23f   :  { %1601 = vmatmul.mubr.bf16.vlgmr.msra.gmra.mrb[16].mxu0 %v2059_v31 }
 0x240   :  { %1604 = vmatprep.mubr.bf16.mxu0 %v2061_v32 }
 0x247   :  { %1605 = vmatmul.mubr.bf16.gmra.mrb[20].mxu0 %v2065_v33 }
 0x248   :  { %1608 = vmatprep.mubr.bf16.mxu0 %v2067_v34 }
 0x24f   :  { %1609 = vmatmul.mubr.bf16.gmra.mrb[24].mxu0 %v2071_v35 }
 0x250   :  { %1612 = vmatprep.mubr.bf16.mxu0 %v2073_v36 }
 0x257   :  { %1613 = vmatmul.mubr.bf16.gmra.mrb[28].mxu0 %v2077_v37 }
 0x258   :  { %1664 = vmatprep.mubr.bf16.mxu0 %v2056_v1 }
 0x312   :  { %v1602_v42 = vpop.f32.mrb[16].mxu0 }
 0x313   :  { %v603_v43 = vadd.f32 %v1602_v42, %v2084_v41  ;;  %v594_v44 = vpop.f32.mrb[17].mxu0 }
 0x314   :  { %v595_v45 = vadd.f32 %v2084_v41, %v594_v44  ;;  %v1603_v46 = vpop.f32.mrb[18].mxu0 }
 0x315   :  { %v675_v47 = vmul.f32 0.01, %v603_v43  ;;  %v606_v48 = vadd.f32 %v1603_v46, %v2084_v41  ;;  %v597_v49 = vpop.f32.mrb[19].mxu0  ;;  %vm659_vm0 = vcmp.ge.f32.partialorder %v603_v43, 0.0 }
 0x316   :  { %v673_v50 = vmul.f32 0.01, %v595_v45  ;;  %v598_v51 = vadd.f32 %v2084_v41, %v597_v49  ;;  %vm657_vm1 = vcmp.ge.f32.partialorder %v595_v45, 0.0 }
 0x317   :  { %vm660_vm2 = vcmp.ge.f32.partialorder %v606_v48, 0.0  ;;  %v676_v52 = vmul.f32 0.01, %v606_v48  ;;  %v691_v54 = vsel %vm659_vm0, %v603_v43, %v675_v47 }
 0x318   :  { %vm658_vm3 = vcmp.ge.f32.partialorder %v598_v51, 0.0  ;;  %v674_v53 = vmul.f32 0.01, %v598_v51  ;;  %v689_v58 = vsel %vm657_vm1, %v595_v45, %v673_v50 }
 0x319   :  { %v692_v55 = vsel %vm660_vm2, %v606_v48, %v676_v52 }
 0x31a   :  { %v706_v56 = vpack.c.bf16 %v692_v55, %v691_v54  ;;  %v1606_v57 = vpop.f32.mrb[20].mxu0  ;;  %v690_v59 = vsel %vm658_vm3, %v598_v51, %v674_v53 }
 0x31b   :  { %v619_v60 = vadd.f32 %v1606_v57, %v2084_v41  ;;  %v610_v61 = vpop.f32.mrb[21].mxu0  ;;  %v705_v62 = vpack.c.bf16 %v690_v59, %v689_v58  ;;  %v1809_v59 = vld [vmem:[#allocation8 + $0x80] sm:$0xff]  }
 0x31c   :  { %v611_v63 = vadd.f32 %v2084_v41, %v610_v61  ;;  %v1607_v0 = vpop.f32.mrb[22].mxu0  ;;  %1680 = vmatprep.subr.bf16.mxu1 %v1809_v59  ;;  %v1812_v61 = vld [vmem:[#allocation8 + $0x98] sm:$0xff]  }
 0x31d   :  { %v679_v2 = vmul.f32 0.01, %v619_v60  ;;  %v622_v3 = vadd.f32 %v1607_v0, %v2084_v41  ;;  %v613_v4 = vpop.f32.mrb[23].mxu0  ;;  %1632 = vmatprep.mubr.bf16.mxu1 %v705_v62  ;;  %vm663_vm4 = vcmp.ge.f32.partialorder %v619_v60, 0.0  ;;  %v1813_v62 = vld [vmem:[#allocation8 + $0xa0] sm:$0xff]  }
 0x31e   :  { %v677_v5 = vmul.f32 0.01, %v611_v63  ;;  %v614_v6 = vadd.f32 %v2084_v41, %v613_v4  ;;  %1633 = vmatmul.mubr.bf16.vlgmr.msra.gmra.mrb[16].mxu1 %v706_v56  ;;  %vm661_vm5 = vcmp.ge.f32.partialorder %v611_v63, 0.0 }
 0x31f   :  { %vm664_vm6 = vcmp.ge.f32.partialorder %v622_v3, 0.0  ;;  %v680_v7 = vmul.f32 0.01, %v622_v3  ;;  %v695_v9 = vsel %vm663_vm4, %v619_v60, %v679_v2  ;;  %v1810_v60 = vld [vmem:[#allocation8 + $0x88] sm:$0xff]   ;;  %1681 = vmatpush3.bf16.msra.mxu1 %v1809_v59 }
 0x320   :  { %vm662_vm7 = vcmp.ge.f32.partialorder %v614_v6, 0.0  ;;  %v678_v8 = vmul.f32 0.01, %v614_v6  ;;  %v693_v12 = vsel %vm661_vm5, %v611_v63, %v677_v5  ;;  %1682 = vmatprep.subr.bf16.mxu1 %v1810_v60 }
 0x321   :  { %v696_v10 = vsel %vm664_vm6, %v622_v3, %v680_v7 }
 0x322   :  { %v1610_v11 = vpop.f32.mrb[24].mxu0  ;;  %v694_v13 = vsel %vm662_vm7, %v614_v6, %v678_v8  ;;  %v708_v14 = vpack.c.bf16 %v696_v10, %v695_v9 }
 0x323   :  { %v635_v15 = vadd.f32 %v1610_v11, %v2084_v41  ;;  %v626_v16 = vpop.f32.mrb[25].mxu0  ;;  %v707_v17 = vpack.c.bf16 %v694_v13, %v693_v12  ;;  %1683 = vmatpush3.bf16.msra.mxu1 %v1810_v60 }
 0x324   :  { %v627_v18 = vadd.f32 %v2084_v41, %v626_v16  ;;  %v1611_v19 = vpop.f32.mrb[26].mxu0 }
 0x325   :  { %v683_v20 = vmul.f32 0.01, %v635_v15  ;;  %v638_v21 = vadd.f32 %v1611_v19, %v2084_v41  ;;  %v629_v22 = vpop.f32.mrb[27].mxu0  ;;  %1636 = vmatprep.mubr.bf16.mxu1 %v707_v17  ;;  %vm667_vm8 = vcmp.ge.f32.partialorder %v635_v15, 0.0 }
 0x326   :  { %v681_v23 = vmul.f32 0.01, %v627_v18  ;;  %v630_v24 = vadd.f32 %v2084_v41, %v629_v22  ;;  %1637 = vmatmul.mubr.bf16.gmra.mrb[20].mxu1 %v708_v14  ;;  %vm665_vm9 = vcmp.ge.f32.partialorder %v627_v18, 0.0 }
 0x327   :  { %vm668_vm10 = vcmp.ge.f32.partialorder %v638_v21, 0.0  ;;  %v684_v25 = vmul.f32 0.01, %v638_v21  ;;  %v699_v27 = vsel %vm667_vm8, %v635_v15, %v683_v20 }
 0x328   :  { %vm666_vm11 = vcmp.ge.f32.partialorder %v630_v24, 0.0  ;;  %v682_v26 = vmul.f32 0.01, %v630_v24  ;;  %v697_v30 = vsel %vm665_vm9, %v627_v18, %v681_v23 }
 0x329   :  { %v700_v28 = vsel %vm668_vm10, %v638_v21, %v684_v25  ;;  %v1815_v25 = vld [vmem:[#allocation8 + $0xb0] sm:$0xff]  }
 0x32a   :  { %v1614_v29 = vpop.f32.mrb[28].mxu0  ;;  %v698_v38 = vsel %vm666_vm11, %v630_v24, %v682_v26  ;;  %v710_v39 = vpack.c.bf16 %v700_v28, %v699_v27  ;;  %v1814_v24 = vld [vmem:[#allocation8 + $0xa8] sm:$0xff]   ;;  %v1816_v26 = vld [vmem:[#allocation8 + $0xb8] sm:$0xff]   ;;  %v2113_v27 = vld [vmem:[%s2158_s5 + $0x1] ss:$0 sm:$0xff] }
 0x32b   :  { %v651_v40 = vadd.f32 %v1614_v29, %v2084_v41  ;;  %v642_v42 = vpop.f32.mrb[29].mxu0  ;;  %v709_v43 = vpack.c.bf16 %v698_v38, %v697_v30 }
 0x32c   :  { %v643_v44 = vadd.f32 %v2084_v41, %v642_v42  ;;  %v1615_v45 = vpop.f32.mrb[30].mxu0 }
 0x32d   :  { %v687_v46 = vmul.f32 0.01, %v651_v40  ;;  %v654_v47 = vadd.f32 %v1615_v45, %v2084_v41  ;;  %v645_v48 = vpop.f32.mrb[31].mxu0  ;;  %1640 = vmatprep.mubr.bf16.mxu1 %v709_v43  ;;  %vm671_vm12 = vcmp.ge.f32.partialorder %v651_v40, 0.0 }
 0x32e   :  { %v685_v49 = vmul.f32 0.01, %v643_v44  ;;  %v646_v50 = vadd.f32 %v2084_v41, %v645_v48  ;;  %1641 = vmatmul.mubr.bf16.gmra.mrb[24].mxu1 %v710_v39  ;;  %vm669_vm13 = vcmp.ge.f32.partialorder %v643_v44, 0.0  ;;  %v1811_v41 = vld [vmem:[#allocation8 + $0x90] sm:$0xff]  }
 0x32f   :  { %vm672_vm14 = vcmp.ge.f32.partialorder %v654_v47, 0.0  ;;  %v688_v51 = vmul.f32 0.01, %v654_v47  ;;  %v703_v53 = vsel %vm671_vm12, %v651_v40, %v687_v46  ;;  %1684 = vmatprep.subr.bf16.mxu1 %v1811_v41 }
 0x330   :  { %vm670_vm15 = vcmp.ge.f32.partialorder %v646_v50, 0.0  ;;  %v686_v52 = vmul.f32 0.01, %v646_v50  ;;  %v701_v55 = vsel %vm669_vm13, %v643_v44, %v685_v49  ;;  %1685 = vmatpush3.bf16.msra.mxu1 %v1811_v41 }
 0x331   :  { %v704_v54 = vsel %vm672_vm14, %v654_v47, %v688_v51  ;;  %1686 = vmatprep.subr.bf16.mxu1 %v1812_v61 }
 0x332   :  { %v702_v56 = vsel %vm670_vm15, %v646_v50, %v686_v52  ;;  %v712_v57 = vpack.c.bf16 %v704_v54, %v703_v53 }
 0x333   :  { %v711_v58 = vpack.c.bf16 %v702_v56, %v701_v55 }
 0x334   :  { %1687 = vmatpush3.bf16.msra.mxu1 %v1812_v61 }
 0x335   :  { %1644 = vmatprep.mubr.bf16.mxu1 %v711_v58  ;;  %1688 = vmatprep.subr.bf16.mxu1 %v1813_v62 }
 0x336   :  { %1645 = vmatmul.mubr.bf16.gmra.mrb[28].mxu1 %v712_v57 }
 0x338   :  { %1689 = vmatpush3.bf16.msra.mxu1 %v1813_v62 }
 0x339   :  { %1690 = vmatprep.subr.bf16.mxu1 %v1814_v24 }
 0x33c   :  { %1691 = vmatpush3.bf16.msra.mxu1 %v1814_v24 }
 0x33d   :  { %1692 = vmatprep.subr.bf16.mxu1 %v1815_v25 }
 0x340   :  { %1693 = vmatpush3.bf16.msra.mxu1 %v1815_v25 }
 0x341   :  { %1694 = vmatprep.subr.bf16.mxu1 %v1816_v26 }
 0x344   :  { %1695 = vmatpush3.bf16.msra.mxu1 %v1816_v26 }
 0x3f1   :  { %v1634_v63 = vpop.f32.mrb[16].mxu1 }
 0x3f2   :  { %v812_v0 = vpop.f32.mrb[17].mxu1 }
 0x3f3   :  { %v1635_v2 = vpop.f32.mrb[18].mxu1 }
 0x3f4   :  { %v876_v3 = vpack.c.bf16 %v1635_v2, %v1634_v63  ;;  %v815_v4 = vpop.f32.mrb[19].mxu1 }
 0x3f5   :  { %v875_v5 = vpack.c.bf16 %v815_v4, %v812_v0 }
 0x3f7   :  { %1648 = vmatprep.subr.bf16.mxu0 %v875_v5 }
 0x3f8   :  { %1649 = vmatpush3.bf16.msra.mxu0 %v875_v5 }
 0x3f9   :  { %v1638_v6 = vpop.f32.mrb[20].mxu1  ;;  %1650 = vmatprep.subr.bf16.mxu0 %v876_v3 }
 0x3fa   :  { %v828_v7 = vpop.f32.mrb[21].mxu1 }
 0x3fb   :  { %v1639_v8 = vpop.f32.mrb[22].mxu1 }
 0x3fc   :  { %v878_v9 = vpack.c.bf16 %v1639_v8, %v1638_v6  ;;  %v831_v10 = vpop.f32.mrb[23].mxu1  ;;  %1651 = vmatpush3.bf16.msra.mxu0 %v876_v3 }
 0x3fd   :  { %v877_v11 = vpack.c.bf16 %v831_v10, %v828_v7 }
 0x3ff   :  { %1652 = vmatprep.subr.bf16.mxu0 %v877_v11 }
 0x400   :  { %1653 = vmatpush3.bf16.msra.mxu0 %v877_v11 }
 0x401   :  { %v1642_v12 = vpop.f32.mrb[24].mxu1  ;;  %1654 = vmatprep.subr.bf16.mxu0 %v878_v9 }
 0x402   :  { %v844_v13 = vpop.f32.mrb[25].mxu1 }
 0x403   :  { %v1643_v14 = vpop.f32.mrb[26].mxu1 }
 0x404   :  { %v880_v15 = vpack.c.bf16 %v1643_v14, %v1642_v12  ;;  %v847_v16 = vpop.f32.mrb[27].mxu1  ;;  %1655 = vmatpush3.bf16.msra.mxu0 %v878_v9 }
 0x405   :  { %v879_v17 = vpack.c.bf16 %v847_v16, %v844_v13 }
 0x407   :  { %1656 = vmatprep.subr.bf16.mxu0 %v879_v17 }
 0x408   :  { %1657 = vmatpush3.bf16.msra.mxu0 %v879_v17 }
 0x409   :  { %v1646_v18 = vpop.f32.mrb[28].mxu1  ;;  %1658 = vmatprep.subr.bf16.mxu0 %v880_v15 }
 0x40a   :  { %v860_v19 = vpop.f32.mrb[29].mxu1 }
 0x40b   :  { %v1647_v20 = vpop.f32.mrb[30].mxu1 }
 0x40c   :  { %v882_v21 = vpack.c.bf16 %v1647_v20, %v1646_v18  ;;  %v863_v22 = vpop.f32.mrb[31].mxu1  ;;  %1659 = vmatpush3.bf16.msra.mxu0 %v880_v15 }
 0x40d   :  { %v881_v23 = vpack.c.bf16 %v863_v22, %v860_v19 }
 0x40f   :  { %1660 = vmatprep.subr.bf16.mxu0 %v881_v23 }
 0x410   :  { %1661 = vmatpush3.bf16.msra.mxu0 %v881_v23 }
 0x411   :  { %1662 = vmatprep.subr.bf16.mxu0 %v882_v21 }
 0x414   :  { %1663 = vmatpush3.bf16.msra.mxu0 %v882_v21 }
 0x417   :  { %1665 = vmatmul.mubr.bf16.vlgmr.msra.gmra.mrb[32].mxu0 %v2059_v31 }
 0x418   :  { %1668 = vmatprep.mubr.bf16.mxu0 %v2061_v32 }
 0x41f   :  { %1669 = vmatmul.mubr.bf16.gmra.mrb[36].mxu0 %v2065_v33 }
 0x420   :  { %1672 = vmatprep.mubr.bf16.mxu0 %v2067_v34 }
 0x427   :  { %1673 = vmatmul.mubr.bf16.gmra.mrb[40].mxu0 %v2071_v35 }
 0x428   :  { %1676 = vmatprep.mubr.bf16.mxu0 %v2073_v36 }
 0x42f   :  { %1677 = vmatmul.mubr.bf16.gmra.mrb[44].mxu0 %v2077_v37 }
 0x430   :  { %1728 = vmatprep.mubr.bf16.mxu0 %v2056_v1 }
 0x4ea   :  { %v1666_v28 = vpop.f32.mrb[32].mxu0 }
 0x4eb   :  { %v934_v29 = vadd.f32 %v1666_v28, %v2113_v27  ;;  %v925_v30 = vpop.f32.mrb[33].mxu0 }
 0x4ec   :  { %v926_v1 = vadd.f32 %v2113_v27, %v925_v30  ;;  %v1667_v38 = vpop.f32.mrb[34].mxu0 }
 0x4ed   :  { %v1006_v39 = vmul.f32 0.01, %v934_v29  ;;  %v937_v40 = vadd.f32 %v1667_v38, %v2113_v27  ;;  %v928_v42 = vpop.f32.mrb[35].mxu0  ;;  %vm990_vm0 = vcmp.ge.f32.partialorder %v934_v29, 0.0 }
 0x4ee   :  { %v1004_v43 = vmul.f32 0.01, %v926_v1  ;;  %v929_v44 = vadd.f32 %v2113_v27, %v928_v42  ;;  %vm988_vm1 = vcmp.ge.f32.partialorder %v926_v1, 0.0 }
 0x4ef   :  { %vm991_vm2 = vcmp.ge.f32.partialorder %v937_v40, 0.0  ;;  %v1007_v45 = vmul.f32 0.01, %v937_v40  ;;  %v1022_v47 = vsel %vm990_vm0, %v934_v29, %v1006_v39 }
 0x4f0   :  { %vm989_vm3 = vcmp.ge.f32.partialorder %v929_v44, 0.0  ;;  %v1005_v46 = vmul.f32 0.01, %v929_v44  ;;  %v1020_v51 = vsel %vm988_vm1, %v926_v1, %v1004_v43 }
 0x4f1   :  { %v1023_v48 = vsel %vm991_vm2, %v937_v40, %v1007_v45 }
 0x4f2   :  { %v1037_v49 = vpack.c.bf16 %v1023_v48, %v1022_v47  ;;  %v1670_v50 = vpop.f32.mrb[36].mxu0  ;;  %v1021_v52 = vsel %vm989_vm3, %v929_v44, %v1005_v46 }
 0x4f3   :  { %v950_v53 = vadd.f32 %v1670_v50, %v2113_v27  ;;  %v941_v54 = vpop.f32.mrb[37].mxu0  ;;  %v1036_v55 = vpack.c.bf16 %v1021_v52, %v1020_v51 }
 0x4f4   :  { %v942_v56 = vadd.f32 %v2113_v27, %v941_v54  ;;  %v1671_v57 = vpop.f32.mrb[38].mxu0 }
 0x4f5   :  { %v1010_v58 = vmul.f32 0.01, %v950_v53  ;;  %v953_v59 = vadd.f32 %v1671_v57, %v2113_v27  ;;  %v944_v60 = vpop.f32.mrb[39].mxu0  ;;  %1696 = vmatprep.mubr.bf16.mxu1 %v1036_v55  ;;  %vm994_vm4 = vcmp.ge.f32.partialorder %v950_v53, 0.0 }
 0x4f6   :  { %v1008_v41 = vmul.f32 0.01, %v942_v56  ;;  %v945_v61 = vadd.f32 %v2113_v27, %v944_v60  ;;  %1697 = vmatmul.mubr.bf16.vlgmr.msra.gmra.mrb[32].mxu1 %v1037_v49  ;;  %vm992_vm5 = vcmp.ge.f32.partialorder %v942_v56, 0.0 }
 0x4f7   :  { %vm995_vm6 = vcmp.ge.f32.partialorder %v953_v59, 0.0  ;;  %v1011_v62 = vmul.f32 0.01, %v953_v59  ;;  %v1026_v0 = vsel %vm994_vm4, %v950_v53, %v1010_v58 }
 0x4f8   :  { %vm993_vm7 = vcmp.ge.f32.partialorder %v945_v61, 0.0  ;;  %v1009_v63 = vmul.f32 0.01, %v945_v61  ;;  %v1024_v4 = vsel %vm992_vm5, %v942_v56, %v1008_v41 }
 0x4f9   :  { %v1027_v2 = vsel %vm995_vm6, %v953_v59, %v1011_v62 }
 0x4fa   :  { %v1674_v3 = vpop.f32.mrb[40].mxu0  ;;  %v1025_v5 = vsel %vm993_vm7, %v945_v61, %v1009_v63  ;;  %v1039_v6 = vpack.c.bf16 %v1027_v2, %v1026_v0 }
 0x4fb   :  { %v966_v7 = vadd.f32 %v1674_v3, %v2113_v27  ;;  %v957_v8 = vpop.f32.mrb[41].mxu0  ;;  %v1038_v9 = vpack.c.bf16 %v1025_v5, %v1024_v4 }
 0x4fc   :  { %v958_v10 = vadd.f32 %v2113_v27, %v957_v8  ;;  %v1675_v11 = vpop.f32.mrb[42].mxu0 }
 0x4fd   :  { %v1014_v12 = vmul.f32 0.01, %v966_v7  ;;  %v969_v13 = vadd.f32 %v1675_v11, %v2113_v27  ;;  %v960_v14 = vpop.f32.mrb[43].mxu0  ;;  %1700 = vmatprep.mubr.bf16.mxu1 %v1038_v9  ;;  %vm998_vm8 = vcmp.ge.f32.partialorder %v966_v7, 0.0  ;;  %v1407_v9 = vld [vmem:[%s2158_s5 + $0x2] ss:$0 sm:$0xff] }
 0x4fe   :  { %v1012_v15 = vmul.f32 0.01, %v958_v10  ;;  %v961_v16 = vadd.f32 %v2113_v27, %v960_v14  ;;  %1701 = vmatmul.mubr.bf16.gmra.mrb[36].mxu1 %v1039_v6  ;;  %vm996_vm9 = vcmp.ge.f32.partialorder %v958_v10, 0.0  ;;  %s1941_s5 = smov [#allocation10]  }
 0x4ff   :  { %vm999_vm10 = vcmp.ge.f32.partialorder %v969_v13, 0.0  ;;  %v1015_v17 = vmul.f32 0.01, %v969_v13  ;;  %v1030_v19 = vsel %vm998_vm8, %v966_v7, %v1014_v12  ;;  %s1340_s26 = sshll.u32 %s1941_s5, 4  ;;  %s1341_s26 = int_to_ptr.vmem [resolvable:$true] %s1340_s26 }
 0x500   :  { %vm997_vm11 = vcmp.ge.f32.partialorder %v961_v16, 0.0  ;;  %v1013_v18 = vmul.f32 0.01, %v961_v16  ;;  %v1028_v22 = vsel %vm996_vm9, %v958_v10, %v1012_v15  ;;  %s1905_s27 = scalar_lea.vmem %s1341_s26, 2048  ;;  %p1910_p5 = scmp.lt.s32.totalorder %s1341_s26, %s1341_s26 }
 0x501   :  { %v1031_v20 = vsel %vm999_vm10, %v969_v13, %v1015_v17  ;;  %p1906_p4 = scmp.ne.s32.totalorder %s1341_s26, %s1905_s27  ;;  %p1911_p6 = scmp.lt.s32.totalorder %s1905_s27, %s1905_s27 }
 0x502   :  { %v1678_v21 = vpop.f32.mrb[44].mxu0  ;;  %v1029_v23 = vsel %vm997_vm11, %v961_v16, %v1013_v18  ;;  %v1041_v24 = vpack.c.bf16 %v1031_v20, %v1030_v19 }
 0x503   :  { %v982_v25 = vadd.f32 %v1678_v21, %v2113_v27  ;;  %v973_v26 = vpop.f32.mrb[45].mxu0  ;;  %v1040_v28 = vpack.c.bf16 %v1029_v23, %v1028_v22  ;;  %p1912_p7 = por %p1911_p6, %p1910_p5 }
 0x504   :  { %v974_v29 = vadd.f32 %v2113_v27, %v973_v26  ;;  %v1679_v30 = vpop.f32.mrb[46].mxu0 }
 0x505   :  { %v1018_v1 = vmul.f32 0.01, %v982_v25  ;;  %v985_v38 = vadd.f32 %v1679_v30, %v2113_v27  ;;  %v976_v39 = vpop.f32.mrb[47].mxu0  ;;  %1704 = vmatprep.mubr.bf16.mxu1 %v1040_v28  ;;  %vm1002_vm12 = vcmp.ge.f32.partialorder %v982_v25, 0.0  ;;  %p1913_p8 = pnand %p1912_p7, %p1906_p4 }
 0x506   :  { %v1016_v40 = vmul.f32 0.01, %v974_v29  ;;  %v977_v42 = vadd.f32 %v2113_v27, %v976_v39  ;;  %1705 = vmatmul.mubr.bf16.gmra.mrb[40].mxu1 %v1041_v24  ;;  %vm1000_vm13 = vcmp.ge.f32.partialorder %v974_v29, 0.0 }
 0x507   :  { %vm1003_vm14 = vcmp.ge.f32.partialorder %v985_v38, 0.0  ;;  %v1019_v43 = vmul.f32 0.01, %v985_v38  ;;  %v1034_v45 = vsel %vm1002_vm12, %v982_v25, %v1018_v1 }
 0x508   :  { %vm1001_vm15 = vcmp.ge.f32.partialorder %v977_v42, 0.0  ;;  %v1017_v44 = vmul.f32 0.01, %v977_v42  ;;  %v1032_v47 = vsel %vm1000_vm13, %v974_v29, %v1016_v40 }
 0x509   :  { %v1035_v46 = vsel %vm1003_vm14, %v985_v38, %v1019_v43 }
 0x50a   :  { %v1033_v48 = vsel %vm1001_vm15, %v977_v42, %v1017_v44  ;;  %v1043_v49 = vpack.c.bf16 %v1035_v46, %v1034_v45 }
 0x50b   :  { %v1042_v50 = vpack.c.bf16 %v1033_v48, %v1032_v47 }
 0x50d   :  { %1708 = vmatprep.mubr.bf16.mxu1 %v1042_v50 }
 0x50e   :  { %1709 = vmatmul.mubr.bf16.gmra.mrb[44].mxu1 %v1043_v49 }
 0x50f   :  { %1736 = vmatprep.mubr.bf16.mxu1 %v2067_v34 }
 0x5c9   :  { %v1698_v51 = vpop.f32.mrb[32].mxu1 }
 0x5ca   :  { %v1143_v52 = vpop.f32.mrb[33].mxu1 }
 0x5cb   :  { %v1699_v53 = vpop.f32.mrb[34].mxu1 }
 0x5cc   :  { %v1207_v27 = vpack.c.bf16 %v1699_v53, %v1698_v51  ;;  %v1146_v54 = vpop.f32.mrb[35].mxu1 }
 0x5cd   :  { %v1206_v55 = vpack.c.bf16 %v1146_v54, %v1143_v52 }
 0x5cf   :  { %1712 = vmatprep.subr.bf16.mxu0 %v1206_v55  ;;  %1744 = vmatprep.subr.bf16.mxu1 %v1206_v55 }
 0x5d0   :  { %1713 = vmatpush3.bf16.msra.mxu0 %v1206_v55  ;;  %1752 = vmatpush3.bf16.msra.mxu1 %v1206_v55 }
 0x5d1   :  { %v1702_v56 = vpop.f32.mrb[36].mxu1  ;;  %1714 = vmatprep.subr.bf16.mxu0 %v1207_v27  ;;  %1745 = vmatprep.subr.bf16.mxu1 %v1207_v27 }
 0x5d2   :  { %v1159_v57 = vpop.f32.mrb[37].mxu1 }
 0x5d3   :  { %v1703_v58 = vpop.f32.mrb[38].mxu1 }
 0x5d4   :  { %v1209_v59 = vpack.c.bf16 %v1703_v58, %v1702_v56  ;;  %v1162_v60 = vpop.f32.mrb[39].mxu1  ;;  %1715 = vmatpush3.bf16.msra.mxu0 %v1207_v27  ;;  %1753 = vmatpush3.bf16.msra.mxu1 %v1207_v27 }
 0x5d5   :  { %v1208_v34 = vpack.c.bf16 %v1162_v60, %v1159_v57 }
 0x5d7   :  { %1716 = vmatprep.subr.bf16.mxu0 %v1208_v34  ;;  %1746 = vmatprep.subr.bf16.mxu1 %v1208_v34 }
 0x5d8   :  { %1717 = vmatpush3.bf16.msra.mxu0 %v1208_v34  ;;  %1754 = vmatpush3.bf16.msra.mxu1 %v1208_v34 }
 0x5d9   :  { %v1706_v41 = vpop.f32.mrb[40].mxu1  ;;  %1718 = vmatprep.subr.bf16.mxu0 %v1209_v59  ;;  %1747 = vmatprep.subr.bf16.mxu1 %v1209_v59 }
 0x5da   :  { %v1175_v61 = vpop.f32.mrb[41].mxu1 }
 0x5db   :  { %v1707_v62 = vpop.f32.mrb[42].mxu1 }
 0x5dc   :  { %v1211_v63 = vpack.c.bf16 %v1707_v62, %v1706_v41  ;;  %v1178_v0 = vpop.f32.mrb[43].mxu1  ;;  %1719 = vmatpush3.bf16.msra.mxu0 %v1209_v59  ;;  %1755 = vmatpush3.bf16.msra.mxu1 %v1209_v59 }
 0x5dd   :  { %v1210_v2 = vpack.c.bf16 %v1178_v0, %v1175_v61 }
 0x5df   :  { %1720 = vmatprep.subr.bf16.mxu0 %v1210_v2  ;;  %1748 = vmatprep.subr.bf16.mxu1 %v1210_v2 }
 0x5e0   :  { %1721 = vmatpush3.bf16.msra.mxu0 %v1210_v2  ;;  %1756 = vmatpush3.bf16.msra.mxu1 %v1210_v2 }
 0x5e1   :  { %v1710_v3 = vpop.f32.mrb[44].mxu1  ;;  %1722 = vmatprep.subr.bf16.mxu0 %v1211_v63  ;;  %1749 = vmatprep.subr.bf16.mxu1 %v1211_v63 }
 0x5e2   :  { %v1191_v4 = vpop.f32.mrb[45].mxu1 }
 0x5e3   :  { %v1711_v5 = vpop.f32.mrb[46].mxu1 }
 0x5e4   :  { %v1213_v6 = vpack.c.bf16 %v1711_v5, %v1710_v3  ;;  %v1194_v7 = vpop.f32.mrb[47].mxu1  ;;  %1723 = vmatpush3.bf16.msra.mxu0 %v1211_v63  ;;  %1757 = vmatpush3.bf16.msra.mxu1 %v1211_v63 }
 0x5e5   :  { %v1212_v8 = vpack.c.bf16 %v1194_v7, %v1191_v4 }
 0x5e7   :  { %1724 = vmatprep.subr.bf16.mxu0 %v1212_v8  ;;  %1750 = vmatprep.subr.bf16.mxu1 %v1212_v8 }
 0x5e8   :  { %1725 = vmatpush3.bf16.msra.mxu0 %v1212_v8  ;;  %1758 = vmatpush3.bf16.msra.mxu1 %v1212_v8 }
 0x5e9   :  { %1726 = vmatprep.subr.bf16.mxu0 %v1213_v6  ;;  %1751 = vmatprep.subr.bf16.mxu1 %v1213_v6 }
 0x5ec   :  { %1727 = vmatpush3.bf16.msra.mxu0 %v1213_v6  ;;  %1759 = vmatpush3.bf16.msra.mxu1 %v1213_v6 }
 0x5ef   :  { %1729 = vmatmul.mubr.bf16.vlgmr.msra.gmra.mrb[48].mxu0 %v2059_v31  ;;  %1737 = vmatmul.mubr.bf16.vlgmr.msra.gmra.mrb[48].mxu1 %v2071_v35 }
 0x5f0   :  { %1732 = vmatprep.mubr.bf16.mxu0 %v2061_v32  ;;  %1740 = vmatprep.mubr.bf16.mxu1 %v2073_v36 }
 0x5f7   :  { %1733 = vmatmul.mubr.bf16.gmra.mrb[52].mxu0 %v2065_v33  ;;  %1741 = vmatmul.mubr.bf16.gmra.mrb[52].mxu1 %v2077_v37 }
 0x6c2   :  { %v1730_v10 = vpop.f32.mrb[48].mxu0  ;;  %v1738_v11 = vpop.f32.mrb[48].mxu1 }
 0x6c3   :  { %v1265_v12 = vadd.f32 %v1730_v10, %v1407_v9  ;;  %v1297_v13 = vadd.f32 %v1738_v11, %v1407_v9  ;;  %v1256_v14 = vpop.f32.mrb[49].mxu0  ;;  %v1288_v31 = vpop.f32.mrb[49].mxu1 }
 0x6c4   :  { %v1257_v15 = vadd.f32 %v1407_v9, %v1256_v14  ;;  %v1289_v35 = vadd.f32 %v1407_v9, %v1288_v31  ;;  %v1731_v16 = vpop.f32.mrb[50].mxu0  ;;  %v1739_v32 = vpop.f32.mrb[50].mxu1 }
 0x6c5   :  { %1321 = vst [vmem:[#allocation10 + $0x10] sm:$0xff] %v1265_v12  ;;  %1329 = vst [vmem:[#allocation10 + $0x50] sm:$0xff] %v1297_v13  ;;  %v1268_v36 = vadd.f32 %v1731_v16, %v1407_v9  ;;  %v1300_v33 = vadd.f32 %v1739_v32, %v1407_v9  ;;  %v1259_v17 = vpop.f32.mrb[51].mxu0  ;;  %v1291_v37 = vpop.f32.mrb[51].mxu1 }
 0x6c6   :  { %1319 = vst [vmem:[#allocation10] sm:$0xff] %v1257_v15  ;;  %1327 = vst [vmem:[#allocation10 + $0x40] sm:$0xff] %v1289_v35  ;;  %v1260_v18 = vadd.f32 %v1407_v9, %v1259_v17  ;;  %v1292_v19 = vadd.f32 %v1407_v9, %v1291_v37 }
 0x6c7   :  { %1322 = vst [vmem:[#allocation10 + $0x18] sm:$0xff] %v1268_v36  ;;  %1330 = vst [vmem:[#allocation10 + $0x58] sm:$0xff] %v1300_v33 }
 0x6c8   :  { %1320 = vst [vmem:[#allocation10 + $0x8] sm:$0xff] %v1260_v18  ;;  %1328 = vst [vmem:[#allocation10 + $0x48] sm:$0xff] %v1292_v19 }
 0x6ca   :  { %v1734_v20 = vpop.f32.mrb[52].mxu0  ;;  %v1742_v21 = vpop.f32.mrb[52].mxu1 }
 0x6cb   :  { %v1281_v22 = vadd.f32 %v1734_v20, %v1407_v9  ;;  %v1313_v23 = vadd.f32 %v1742_v21, %v1407_v9  ;;  %v1272_v24 = vpop.f32.mrb[53].mxu0  ;;  %v1304_v25 = vpop.f32.mrb[53].mxu1 }
 0x6cc   :  { %v1273_v26 = vadd.f32 %v1407_v9, %v1272_v24  ;;  %v1305_v28 = vadd.f32 %v1407_v9, %v1304_v25  ;;  %v1735_v29 = vpop.f32.mrb[54].mxu0  ;;  %v1743_v30 = vpop.f32.mrb[54].mxu1 }
 0x6cd   :  { %1325 = vst [vmem:[#allocation10 + $0x30] sm:$0xff] %v1281_v22  ;;  %1333 = vst [vmem:[#allocation10 + $0x70] sm:$0xff] %v1313_v23  ;;  %v1284_v1 = vadd.f32 %v1735_v29, %v1407_v9  ;;  %v1316_v38 = vadd.f32 %v1743_v30, %v1407_v9  ;;  %v1275_v39 = vpop.f32.mrb[55].mxu0  ;;  %v1307_v40 = vpop.f32.mrb[55].mxu1 }
 0x6ce   :  { %1323 = vst [vmem:[#allocation10 + $0x20] sm:$0xff] %v1273_v26  ;;  %1331 = vst [vmem:[#allocation10 + $0x60] sm:$0xff] %v1305_v28  ;;  %v1276_v42 = vadd.f32 %v1407_v9, %v1275_v39  ;;  %v1308_v43 = vadd.f32 %v1407_v9, %v1307_v40 }
 0x6cf   :  { %1326 = vst [vmem:[#allocation10 + $0x38] sm:$0xff] %v1284_v1  ;;  %1334 = vst [vmem:[#allocation10 + $0x78] sm:$0xff] %v1316_v38 }
 0x6d0   :  { %1324 = vst [vmem:[#allocation10 + $0x28] sm:$0xff] %v1276_v42  ;;  %1332 = vst [vmem:[#allocation10 + $0x68] sm:$0xff] %v1308_v43 }
 0x6d1   :  { %1916 = shalt.err (!%p1913_p8)
}
 0x6d2   :  { %s1917_s30 = scalar_lea.hbm %s2159_s6, 2048 }
 0x6d3   :  { %p1918_p9 = scmp.ne.s32.totalorder %s2159_s6, %s1917_s30  ;;  %p1921_p10 = scmp.lt.u32.totalorder %s1917_s30, %s2159_s6 }
 0x6d5   :  { %p1923_p11 = pnand %p1921_p10, %p1918_p9 }
 0x6d7   :  { %1926 = shalt.err (!%p1923_p11)
}
 0x6d8   :  { %s1942_s24 = smov 128   ;;  %s1943_s12 = smov 8  }
 0x6d9   :  { %1346 = dma.vmem_to_hbm [thread:$0]  %s1341_s26, 2048, %s2159_s6, [#allocation4], %s1942_s24, %s1942_s24, %s1943_s12  }
 0x6da   :  { %1933 = dma.done.wait [#allocation4], 2048  }
 0x6db   :  { %1934 = vsyncadd [#allocation4], 4294965248 }
 0x6dc   :  { %1350 = vsyncpa [#allocation3], 1 }
 0x6dd   :  { %1351 = vsyncpa [#allocation6], 1 }
 0x6de   :  { %1352 = vsyncpa [#allocation9], 1 }
 0x6df   :  { %1353 = vsyncpa [#allocation4], 1 }

</bundles_post_ra>
